<compile_context>
chip_gen: v7x
topology: tpu7x:2x2x1
jax: 0.10.0
libtpu: 0.0.40
codegen_flags: <defaults>
</compile_context>

<pallas_src>
import functools

import jax
import jax.numpy as jnp
from jax.experimental import pallas as pl
from jax.experimental.pallas import tpu as pltpu

_LANE = 128     # TPU vreg lane width
_SUBLANE = 8    # f32 sublane count


def _round_up(n, m):
    return ((n + m - 1) // m) * m


def _fcnet_fused_kernel(*refs, n_layers, out_dim):
    """Fused MLP forward.

    refs = (x_ref, w0_ref, b0_ref, w1_ref, b1_ref, ..., o_ref)
      x_ref : (B_pad, Din)        VMEM
      wi_ref: (Din_i, Dout_i_pad) VMEM  (pre-transposed, lane-padded)
      bi_ref: (1, Dout_i_pad)     VMEM  (lane-padded)
      o_ref : (B_pad, out_dim)    VMEM  (true width; stored directly, no wrapper slice)
    """
    x_ref = refs[0]
    o_ref = refs[1 + 2 * n_layers]
    h = x_ref[...]
    for i in range(n_layers):                 # statically unrolled at trace time
        w_ref = refs[1 + 2 * i]
        b_ref = refs[2 + 2 * i]
        h = jnp.dot(h, w_ref[...], preferred_element_type=jnp.float32)
        h = h + b_ref[...]                    # implicit (1,Dout)->(B,Dout) broadcast
        if i < n_layers - 1:
            h = jnp.maximum(h, 0.0)           # ReLU on all but the last layer
    # Store only the true output columns: a single (cheap) masked store beats a
    # separate un-pad slice HLO after the custom call.
    o_ref[...] = h[:, :out_dim].astype(o_ref.dtype)


def init_fcnet_params(key, dims):
    """PyTorch nn.Linear-style params: W (Dout, Din), b (Dout,), U(-1/sqrt(fan_in), +)."""
    params = []
    for in_dim, out_dim in zip(dims[:-1], dims[1:]):
        key, kw, kb = jax.random.split(key, 3)
        bound = 1.0 / jnp.sqrt(jnp.float32(in_dim))
        w = jax.random.uniform(kw, (out_dim, in_dim), jnp.float32, -bound, bound)
        b = jax.random.uniform(kb, (out_dim,), jnp.float32, -bound, bound)
        params.append((w, b))
    return params


def prep_fcnet_params(params_pt):
    """One-time prep, hoisted out of the forward path:
       - transpose each weight to (Din, Dout) for the MXU,
       - reshape each bias to (1, Dout),
       - zero-pad every layer's output width up to a multiple of 128 lanes
         (padded columns are exactly zero through bias/ReLU, so results match).
    Returns (flat tuple of prepped arrays, true final output width)."""
    prepped = []
    prev_pad_width = None
    out_dim = None
    for w_pt, b in params_pt:
        dout, din = w_pt.shape
        din_pad = din if prev_pad_width is None else prev_pad_width
        dout_pad = _round_up(dout, _LANE)
        w = jnp.zeros((din_pad, dout_pad), w_pt.dtype).at[:din, :dout].set(w_pt.T)
        b2 = jnp.zeros((1, dout_pad), b.dtype).at[0, :dout].set(b)
        prepped.extend([w, b2])
        prev_pad_width = dout_pad
        out_dim = dout
    return tuple(prepped), out_dim


@functools.partial(jax.jit, static_argnames=("out_dim",))
def fcnet_forward(x, prepped, *, out_dim):
    """FCNet.forward: one fused Pallas kernel, output stored at true width."""
    n_layers = len(prepped) // 2
    B, din = x.shape

    # Sublane-align the batch (static, trace-time decision). No-op when B % 8 == 0.
    B_pad = _round_up(max(B, 1), _SUBLANE)
    if B_pad != B:
        x = jnp.zeros((B_pad, din), x.dtype).at[:B, :].set(x)

    kernel = functools.partial(_fcnet_fused_kernel, n_layers=n_layers, out_dim=out_dim)
    vmem_spec = pl.BlockSpec(memory_space=pltpu.MemorySpace.VMEM)

    # Roofline numbers: advisory cost estimate + explicit scoped-VMEM budget.
    flops = 0
    param_bytes = 0
    for i in range(n_layers):
        w = prepped[2 * i]
        b = prepped[2 * i + 1]
        flops += 2 * B_pad * w.shape[0] * w.shape[1]
        param_bytes += w.size * w.dtype.itemsize + b.size * b.dtype.itemsize
    io_bytes = (x.size * x.dtype.itemsize + param_bytes
                + B_pad * out_dim * x.dtype.itemsize)
    vmem_bytes = int(min(max(2 * io_bytes + (4 << 20), 8 << 20), 100 << 20))

    out = pl.pallas_call(
        kernel,
        out_shape=jax.ShapeDtypeStruct((B_pad, out_dim), x.dtype),
        in_specs=[vmem_spec] * (1 + 2 * n_layers),
        out_specs=vmem_spec,
        compiler_params=pltpu.CompilerParams(vmem_limit_bytes=vmem_bytes),
        cost_estimate=pl.CostEstimate(
            flops=flops, transcendentals=0, bytes_accessed=io_bytes),
    )(x, *prepped)

    if B_pad != B:
        out = out[:B]
    return out


def fcnet_reference(x, params_pt):
    n = len(params_pt)
    for i, (w, b) in enumerate(params_pt):
        x = x @ w.T + b
        if i < n - 1:
            x = jnp.maximum(x, 0.0)
    return x


if __name__ == "__main__":
    key = jax.random.PRNGKey(0)
    dims = [32, 64, 48, 16]           # FCNet(dims) -> 3 Linear layers
    batch = 8

    kx, kp = jax.random.split(key)
    x = jax.random.normal(kx, (batch, dims[0]), jnp.float32)
    params_pt = init_fcnet_params(kp, dims)
    prepped, out_dim = prep_fcnet_params(params_pt)

    out = fcnet_forward(x, prepped, out_dim=out_dim)
    out = jax.block_until_ready(out)

    ref = fcnet_reference(x, params_pt)
    assert out.shape == (batch, dims[-1])
    assert jnp.allclose(out, ref, atol=1e-4, rtol=1e-4), "mismatch vs reference"

    print("KERNEL_OK")
</pallas_src>

<mosaic_0001>
module attributes {stable_mosaic.version = 11 : i64} {
  func.func @_fcnet_fused_kernel(%arg0: memref<8x32xf32, #tpu.memory_space<vmem>>, %arg1: memref<32x128xf32, #tpu.memory_space<vmem>>, %arg2: memref<1x128xf32, #tpu.memory_space<vmem>>, %arg3: memref<128x128xf32, #tpu.memory_space<vmem>>, %arg4: memref<1x128xf32, #tpu.memory_space<vmem>>, %arg5: memref<128x128xf32, #tpu.memory_space<vmem>>, %arg6: memref<1x128xf32, #tpu.memory_space<vmem>>, %arg7: memref<8x16xf32, #tpu.memory_space<vmem>>) attributes {dimension_semantics = [], scalar_prefetch = 0 : i64, scratch_operands = 0 : i64, tpu.core_type = #tpu.core_type<tc>} {
    %c0 = arith.constant 0 : index
    %c0_0 = arith.constant 0 : index
    %0 = vector.load %arg0[%c0, %c0_0] : memref<8x32xf32, #tpu.memory_space<vmem>>, vector<8x32xf32>
    %c0_1 = arith.constant 0 : index
    %c0_2 = arith.constant 0 : index
    %1 = vector.load %arg1[%c0_1, %c0_2] : memref<32x128xf32, #tpu.memory_space<vmem>>, vector<32x128xf32>
    %cst = arith.constant dense<0.000000e+00> : vector<8x128xf32>
    %2 = tpu.matmul %0, %1, %cst {dimension_numbers = #tpu.dot_dimension_numbers<[1], [0], [0], [1], [0, 0, 1, 1], [], []>} : vector<8x32xf32>, vector<32x128xf32>, vector<8x128xf32> -> vector<8x128xf32>
    %c0_3 = arith.constant 0 : index
    %c0_4 = arith.constant 0 : index
    %3 = vector.load %arg2[%c0_3, %c0_4] : memref<1x128xf32, #tpu.memory_space<vmem>>, vector<1x128xf32>
    %4 = vector.broadcast %3 : vector<1x128xf32> to vector<8x128xf32>
    %5 = arith.addf %2, %4 : vector<8x128xf32>
    %cst_5 = arith.constant 0.000000e+00 : f32
    %6 = vector.broadcast %cst_5 : f32 to vector<8x128xf32>
    %7 = arith.maximumf %5, %6 : vector<8x128xf32>
    %c0_6 = arith.constant 0 : index
    %c0_7 = arith.constant 0 : index
    %8 = vector.load %arg3[%c0_6, %c0_7] : memref<128x128xf32, #tpu.memory_space<vmem>>, vector<128x128xf32>
    %cst_8 = arith.constant dense<0.000000e+00> : vector<8x128xf32>
    %9 = tpu.matmul %7, %8, %cst_8 {dimension_numbers = #tpu.dot_dimension_numbers<[1], [0], [0], [1], [0, 0, 1, 1], [], []>} : vector<8x128xf32>, vector<128x128xf32>, vector<8x128xf32> -> vector<8x128xf32>
    %c0_9 = arith.constant 0 : index
    %c0_10 = arith.constant 0 : index
    %10 = vector.load %arg4[%c0_9, %c0_10] : memref<1x128xf32, #tpu.memory_space<vmem>>, vector<1x128xf32>
    %11 = vector.broadcast %10 : vector<1x128xf32> to vector<8x128xf32>
    %12 = arith.addf %9, %11 : vector<8x128xf32>
    %cst_11 = arith.constant 0.000000e+00 : f32
    %13 = vector.broadcast %cst_11 : f32 to vector<8x128xf32>
    %14 = arith.maximumf %12, %13 : vector<8x128xf32>
    %c0_12 = arith.constant 0 : index
    %c0_13 = arith.constant 0 : index
    %15 = vector.load %arg5[%c0_12, %c0_13] : memref<128x128xf32, #tpu.memory_space<vmem>>, vector<128x128xf32>
    %cst_14 = arith.constant dense<0.000000e+00> : vector<8x128xf32>
    %16 = tpu.matmul %14, %15, %cst_14 {dimension_numbers = #tpu.dot_dimension_numbers<[1], [0], [0], [1], [0, 0, 1, 1], [], []>} : vector<8x128xf32>, vector<128x128xf32>, vector<8x128xf32> -> vector<8x128xf32>
    %c0_15 = arith.constant 0 : index
    %c0_16 = arith.constant 0 : index
    %17 = vector.load %arg6[%c0_15, %c0_16] : memref<1x128xf32, #tpu.memory_space<vmem>>, vector<1x128xf32>
    %18 = vector.broadcast %17 : vector<1x128xf32> to vector<8x128xf32>
    %19 = arith.addf %16, %18 : vector<8x128xf32>
    %20 = vector.extract_strided_slice %19 {offsets = [0, 0], sizes = [8, 16], strides = [1, 1]} : vector<8x128xf32> to vector<8x16xf32>
    %c0_17 = arith.constant 0 : index
    %c0_18 = arith.constant 0 : index
    %21 = vector.load %arg7[%c0_17, %c0_18] : memref<8x16xf32, #tpu.memory_space<vmem>>, vector<8x16xf32>
    tpu.vector_store %arg7[%c0_17, %c0_18], %20 {strides = array<i32>} : memref<8x16xf32, #tpu.memory_space<vmem>>, vector<8x16xf32>,
    return
  }
}

</mosaic_0001>

<bundles_post_ra>
// kernel: fcnet_forward.1
= control target key start
LH: loop header
LB: loop body
LE: loop exit
PB: predicated region body
PF: predicated region fallthrough
CT: control target
= control target key end

     0   :  { %12 = vsyncpa [#allocation3], 0  ;;  %s828_s0 = inlined_call_operand.hbm [shape: f32[8,32], index: 0, kind: input, shape index: {}]   ;;  %s829_s1 = inlined_call_operand.hbm [shape: f32[32,128], index: 1, kind: input, shape index: {}]   ;;  %s830_s2 = inlined_call_operand.vmem [shape: f32[1,128], index: 2, kind: input, shape index: {}]   ;;  %s831_s3 = inlined_call_operand.hbm [shape: f32[128,128], index: 3, kind: input, shape index: {}]   ;;  %s832_s4 = inlined_call_operand.vmem [shape: f32[1,128], index: 4, kind: input, shape index: {}]   ;;  %s833_s5 = inlined_call_operand.hbm [shape: f32[128,128], index: 5, kind: input, shape index: {}]   ;;  %s834_s6 = inlined_call_operand.vmem [shape: f32[1,128], index: 6, kind: input, shape index: {}]   ;;  %s835_s7 = inlined_call_operand.hbm [shape: f32[8,16], index: 7, kind: output, shape index: {}]  }
   0x1   :  { %13 = vsyncpa [#allocation6], 0 }
   0x2   :  { %14 = vsyncpa [#allocation9], 0 }
   0x3   :  { %15 = vsyncpa [#allocation4], 0  ;;  %s679_s24 = smov [#allocation5]   ;;  %s561_s28 = scalar_lea.hbm %s829_s1, 512 }
   0x4   :  { %s31_s25 = sshll.u32 %s679_s24, 4  ;;  %p562_p0 = scmp.ne.s32.totalorder %s829_s1, %s561_s28  ;;  %s32_s25 = int_to_ptr.vmem [resolvable:$true] %s31_s25 }
   0x5   :  { %p565_p1 = scmp.lt.u32.totalorder %s561_s28, %s829_s1 }
   0x7   :  { %p567_p2 = pnand %p565_p1, %p562_p0 }
   0x9   :  { %570 = shalt.err (!%p567_p2)
}
   0xa   :  { %s571_s10 = scalar_lea.vmem %s32_s25, 512  ;;  %p576_p4 = scmp.lt.s32.totalorder %s32_s25, %s32_s25 }
   0xb   :  { %p572_p3 = scmp.ne.s32.totalorder %s32_s25, %s571_s10  ;;  %p577_p5 = scmp.lt.s32.totalorder %s571_s10, %s571_s10 }
   0xd   :  { %p578_p6 = por %p577_p5, %p576_p4 }
   0xf   :  { %p579_p7 = pnand %p578_p6, %p572_p3 }
  0x11   :  { %582 = shalt.err (!%p579_p7)
}
  0x12   :  { %s680_s11 = smov 128   ;;  %s681_s12 = smov 8  }
  0x13   :  { %37 = dma.hbm_to_vmem [thread:$0]  %s829_s1, 512, %s32_s25, [#allocation6], %s680_s11, %s680_s11, %s681_s12  }
  0x14   :  { %s682_s15 = smov [#allocation2]   ;;  %s683_s17 = smov [#allocation7]  }
  0x15   :  { %s22_s16 = sshll.u32 %s682_s15, 4  ;;  %s45_s18 = sshll.u32 %s683_s17, 4  ;;  %s23_s16 = int_to_ptr.vmem [resolvable:$true] %s22_s16  ;;  %s46_s18 = int_to_ptr.vmem [resolvable:$true] %s45_s18 }
  0x16   :  { %s583_s21 = scalar_lea.hbm %s828_s0, 128 }
  0x17   :  { %p584_p8 = scmp.ne.s32.totalorder %s828_s0, %s583_s21  ;;  %p587_p9 = scmp.lt.u32.totalorder %s583_s21, %s828_s0 }
  0x19   :  { %p589_p10 = pnand %p587_p9, %p584_p8 }
  0x1b   :  { %592 = shalt.err (!%p589_p10)
}
  0x1c   :  { %s593_s1 = scalar_lea.vmem %s23_s16, 128  ;;  %p598_p12 = scmp.lt.s32.totalorder %s23_s16, %s23_s16 }
  0x1d   :  { %p594_p11 = scmp.ne.s32.totalorder %s23_s16, %s593_s1  ;;  %p599_p13 = scmp.lt.s32.totalorder %s593_s1, %s593_s1 }
  0x1f   :  { %p600_p0 = por %p599_p13, %p598_p12 }
  0x21   :  { %p601_p1 = pnand %p600_p0, %p594_p11 }
  0x23   :  { %604 = shalt.err (!%p601_p1)
}
  0x24   :  { %25 = dma.hbm_to_vmem [thread:$0]  %s828_s0, 128, %s23_s16, [#allocation3]  }
  0x25   :  { %s605_s30 = scalar_lea.hbm %s831_s3, 2048 }
  0x26   :  { %p606_p2 = scmp.ne.s32.totalorder %s831_s3, %s605_s30  ;;  %p609_p3 = scmp.lt.u32.totalorder %s605_s30, %s831_s3 }
  0x28   :  { %p611_p4 = pnand %p609_p3, %p606_p2 }
  0x2a   :  { %614 = shalt.err (!%p611_p4)
}
  0x2b   :  { %s615_s14 = scalar_lea.vmem %s46_s18, 2048  ;;  %p620_p6 = scmp.lt.s32.totalorder %s46_s18, %s46_s18 }
  0x2c   :  { %p616_p5 = scmp.ne.s32.totalorder %s46_s18, %s615_s14  ;;  %p621_p7 = scmp.lt.s32.totalorder %s615_s14, %s615_s14 }
  0x2e   :  { %p622_p8 = por %p621_p7, %p620_p6 }
  0x30   :  { %p623_p9 = pnand %p622_p8, %p616_p5 }
  0x32   :  { %626 = shalt.err (!%p623_p9)
}
  0x33   :  { %51 = dma.hbm_to_vmem [thread:$0]  %s831_s3, 2048, %s46_s18, [#allocation6], %s680_s11, %s680_s11, %s681_s12  }
  0x34   :  { %s684_s16 = smov [#allocation8]   ;;  %s627_s21 = scalar_lea.hbm %s833_s5, 2048 }
  0x35   :  { %s59_s17 = sshll.u32 %s684_s16, 4  ;;  %p628_p10 = scmp.ne.s32.totalorder %s833_s5, %s627_s21  ;;  %s60_s17 = int_to_ptr.vmem [resolvable:$true] %s59_s17 }
  0x36   :  { %p631_p11 = scmp.lt.u32.totalorder %s627_s21, %s833_s5 }
  0x38   :  { %p633_p12 = pnand %p631_p11, %p628_p10 }
  0x3a   :  { %636 = shalt.err (!%p633_p12)
}
  0x3b   :  { %s637_s1 = scalar_lea.vmem %s60_s17, 2048  ;;  %p642_p0 = scmp.lt.s32.totalorder %s60_s17, %s60_s17 }
  0x3c   :  { %p638_p13 = scmp.ne.s32.totalorder %s60_s17, %s637_s1  ;;  %p643_p1 = scmp.lt.s32.totalorder %s637_s1, %s637_s1 }
  0x3e   :  { %p644_p2 = por %p643_p1, %p642_p0 }
  0x40   :  { %p645_p3 = pnand %p644_p2, %p638_p13 }
  0x42   :  { %648 = shalt.err (!%p645_p3)
}
  0x43   :  { %65 = dma.hbm_to_vmem [thread:$0]  %s833_s5, 2048, %s60_s17, [#allocation9], %s680_s11, %s680_s11, %s681_s12  }
  0x44   :  { %671 = dma.done.wait [#allocation3], 128  }
  0x45   :  { %672 = vsyncadd [#allocation3], 4294967168 }
  0x46   :  { %673 = dma.done.wait [#allocation6], 2560  }
  0x47   :  { %674 = vsyncadd [#allocation6], 4294964736 }
  0x48   :  { %675 = dma.done.wait [#allocation9], 2048  }
  0x49   :  { %676 = vsyncadd [#allocation9], 4294965248  ;;  %v685_v0 = vmov 0.0|0.0   ;;  %vm686_vm0 = vmmov 0   ;;  %v687_v1 = vmov 0.0   ;;  %v81_v2 = vld [vmem:[#allocation5] sm:$0xff] }
  0x4a   :  { %497 = vmatprep.subr.bf16.mxu0 %v685_v0  ;;  %424 = vmatprep.mubr.msk.f32.mxu0 %vm686_vm0, %v687_v1  ;;  %v82_v3 = vld [vmem:[#allocation5 + $0x8] sm:$0xff]  ;;  %v83_v4 = vld [vmem:[#allocation5 + $0x10] sm:$0xff]  ;;  %v84_v6 = vld [vmem:[#allocation5 + $0x18] sm:$0xff]  ;;  %vm92_vm1 = vcmask 261120   ;;  %s688_s28 = smov [#allocation10]   ;;  %vm354_vm2 = vcmask 130048  }
  0x4b   :  { %503 = vmatprep.subr.bf16.mxu1 %v685_v0  ;;  %459 = vmatprep.mubr.msk.f32.mxu1 %vm686_vm0, %v687_v1  ;;  %v498_v5 = vpack.c.bf16 %v82_v3, %v81_v2  ;;  %v167_v7 = vld [vmem:[#allocation7] sm:$0xff]  ;;  %v168_v8 = vld [vmem:[#allocation7 + $0x8] sm:$0xff]  ;;  %v169_v9 = vld [vmem:[#allocation7 + $0x10] sm:$0xff]  ;;  %v501_v11 = vpack.c.bf16 %v84_v6, %v83_v4  ;;  %s362_s29 = sshll.u32 %s688_s28, 4  ;;  %s363_s29 = int_to_ptr.vmem [resolvable:$true] %s362_s29 }
  0x4c   :  { %v170_v10 = vld [vmem:[#allocation7 + $0x18] sm:$0xff]  ;;  %v504_v12 = vpack.c.bf16 %v168_v8, %v167_v7  ;;  %v171_v14 = vld [vmem:[#allocation7 + $0x20] sm:$0xff]  ;;  %v172_v15 = vld [vmem:[#allocation7 + $0x28] sm:$0xff]  ;;  %s649_s30 = scalar_lea.vmem %s363_s29, 128  ;;  %p654_p5 = scmp.lt.s32.totalorder %s363_s29, %s363_s29 }
  0x4d   :  { %499 = vmatpush3.bf16.msra.mxu0 %v498_v5  ;;  %v507_v13 = vpack.c.bf16 %v170_v10, %v169_v9  ;;  %v80_v16 = vld [vmem:[#allocation2] sm:$0xff]  ;;  %v510_v17 = vpack.c.bf16 %v172_v15, %v171_v14  ;;  %v173_v18 = vld [vmem:[#allocation7 + $0x30] sm:$0xff]  ;;  %v175_v21 = vld [vmem:[#allocation7 + $0x40] sm:$0xff]  ;;  %p650_p4 = scmp.ne.s32.totalorder %s363_s29, %s649_s30  ;;  %p655_p6 = scmp.lt.s32.totalorder %s649_s30, %s649_s30 }
  0x4e   :  { %500 = vmatprep.subr.bf16.mxu0 %v685_v0  ;;  %505 = vmatpush3.bf16.msra.mxu1 %v504_v12  ;;  %v174_v19 = vld [vmem:[#allocation7 + $0x38] sm:$0xff]  ;;  %v176_v22 = vld [vmem:[#allocation7 + $0x48] sm:$0xff]  ;;  %v177_v24 = vld [vmem:[#allocation7 + $0x50] sm:$0xff] }
  0x4f   :  { %506 = vmatprep.subr.bf16.mxu1 %v685_v0  ;;  %v513_v20 = vpack.c.bf16 %v174_v19, %v173_v18  ;;  %v516_v23 = vpack.c.bf16 %v176_v22, %v175_v21  ;;  %v178_v25 = vld [vmem:[#allocation7 + $0x58] sm:$0xff]  ;;  %v179_v27 = vld [vmem:[#allocation7 + $0x60] sm:$0xff]  ;;  %v180_v28 = vld [vmem:[#allocation7 + $0x68] sm:$0xff]  ;;  %p656_p7 = por %p655_p6, %p654_p5 }
  0x50   :  { %v519_v26 = vpack.c.bf16 %v178_v25, %v177_v24  ;;  %v522_v29 = vpack.c.bf16 %v180_v28, %v179_v27  ;;  %v181_v30 = vld [vmem:[#allocation7 + $0x70] sm:$0xff]  ;;  %v182_v31 = vld [vmem:[#allocation7 + $0x78] sm:$0xff]  ;;  %v261_v33 = vld [vmem:[#allocation8] sm:$0xff] }
  0x51   :  { %502 = vmatpush3.bf16.msra.mxu0 %v501_v11  ;;  %v525_v32 = vpack.c.bf16 %v182_v31, %v181_v30  ;;  %v262_v34 = vld [vmem:[#allocation8 + $0x8] sm:$0xff]  ;;  %v263_v35 = vld [vmem:[#allocation8 + $0x10] sm:$0xff]  ;;  %v264_v37 = vld [vmem:[#allocation8 + $0x18] sm:$0xff]  ;;  %p657_p8 = pnand %p656_p7, %p650_p4 }
  0x52   :  { %527 = vmatprep.subr.bf16.mxu0 %v685_v0  ;;  %508 = vmatpush3.bf16.msra.mxu1 %v507_v13  ;;  %v528_v36 = vpack.c.bf16 %v262_v34, %v261_v33  ;;  %v531_v38 = vpack.c.bf16 %v264_v37, %v263_v35  ;;  %v265_v39 = vld [vmem:[#allocation8 + $0x20] sm:$0xff]  ;;  %v266_v40 = vld [vmem:[#allocation8 + $0x28] sm:$0xff]  ;;  %v267_v42 = vld [vmem:[#allocation8 + $0x30] sm:$0xff] }
  0x53   :  { %509 = vmatprep.subr.bf16.mxu1 %v685_v0  ;;  %v534_v41 = vpack.c.bf16 %v266_v40, %v265_v39  ;;  %v268_v43 = vld [vmem:[#allocation8 + $0x38] sm:$0xff]  ;;  %v269_v45 = vld [vmem:[#allocation8 + $0x40] sm:$0xff]  ;;  %v270_v46 = vld [vmem:[#allocation8 + $0x48] sm:$0xff] }
  0x54   :  { %425 = vmatmul.mubr.msk.f32.vlgmr.msra.gmra.mrb[0].mxu0 %vm92_vm1, %v80_v16  ;;  %v537_v44 = vpack.c.bf16 %v268_v43, %v267_v42  ;;  %v540_v47 = vpack.c.bf16 %v270_v46, %v269_v45  ;;  %v271_v48 = vld [vmem:[#allocation8 + $0x50] sm:$0xff]  ;;  %v272_v49 = vld [vmem:[#allocation8 + $0x58] sm:$0xff]  ;;  %v273_v51 = vld [vmem:[#allocation8 + $0x60] sm:$0xff] }
  0x55   :  { %494 = vmatprep.mubr.msk.f32.mxu0 %vm686_vm0, %v687_v1  ;;  %529 = vmatpush3.bf16.msra.mxu0 %v528_v36  ;;  %v543_v50 = vpack.c.bf16 %v272_v49, %v271_v48  ;;  %v274_v52 = vld [vmem:[#allocation8 + $0x68] sm:$0xff]  ;;  %v373_v54 = vld [vmem:[%s830_s2] ss:$0 sm:$0xff]  ;;  %v275_v59 = vld [vmem:[#allocation8 + $0x70] sm:$0xff] }
  0x56   :  { %511 = vmatpush3.bf16.msra.mxu1 %v510_v17  ;;  %530 = vmatprep.subr.bf16.mxu0 %v685_v0  ;;  %v546_v53 = vpack.c.bf16 %v274_v52, %v273_v51  ;;  %v276_v60 = vld [vmem:[#allocation8 + $0x78] sm:$0xff] }
  0x57   :  { %512 = vmatprep.subr.bf16.mxu1 %v685_v0  ;;  %v549_v61 = vpack.c.bf16 %v276_v60, %v275_v59  ;;  %v375_v62 = vld [vmem:[%s832_s4] ss:$0 sm:$0xff] }
  0x58   :  { %v376_v3 = vld [vmem:[%s834_s6] ss:$0 sm:$0xff] }
  0x59   :  { %532 = vmatpush3.bf16.msra.mxu0 %v531_v38 }
  0x5a   :  { %514 = vmatpush3.bf16.msra.mxu1 %v513_v20  ;;  %533 = vmatprep.subr.bf16.mxu0 %v685_v0 }
  0x5b   :  { %515 = vmatprep.subr.bf16.mxu1 %v685_v0 }
  0x5d   :  { %535 = vmatpush3.bf16.msra.mxu0 %v534_v41 }
  0x5e   :  { %517 = vmatpush3.bf16.msra.mxu1 %v516_v23  ;;  %536 = vmatprep.subr.bf16.mxu0 %v685_v0 }
  0x5f   :  { %518 = vmatprep.subr.bf16.mxu1 %v685_v0 }
  0x61   :  { %538 = vmatpush3.bf16.msra.mxu0 %v537_v44 }
  0x62   :  { %520 = vmatpush3.bf16.msra.mxu1 %v519_v26  ;;  %539 = vmatprep.subr.bf16.mxu0 %v685_v0 }
  0x63   :  { %521 = vmatprep.subr.bf16.mxu1 %v685_v0 }
  0x65   :  { %541 = vmatpush3.bf16.msra.mxu0 %v540_v47 }
  0x66   :  { %523 = vmatpush3.bf16.msra.mxu1 %v522_v29  ;;  %542 = vmatprep.subr.bf16.mxu0 %v685_v0 }
  0x67   :  { %524 = vmatprep.subr.bf16.mxu1 %v685_v0 }
  0x69   :  { %544 = vmatpush3.bf16.msra.mxu0 %v543_v50 }
  0x6a   :  { %526 = vmatpush3.bf16.msra.mxu1 %v525_v32  ;;  %545 = vmatprep.subr.bf16.mxu0 %v685_v0 }
  0x6d   :  { %547 = vmatpush3.bf16.msra.mxu0 %v546_v53 }
  0x6e   :  { %548 = vmatprep.subr.bf16.mxu0 %v685_v0 }
  0x71   :  { %550 = vmatpush3.bf16.msra.mxu0 %v549_v61 }
 0x127   :  { %v162_v55 = vpop.f32.mrb[0].mxu0 }
 0x128   :  { %v163_v56 = vadd.f32 %v373_v54, %v162_v55  ;;  %v426_v57 = vpop.f32.mrb[1].mxu0 }
 0x12a   :  { %v166_v58 = vmax.f32 %v163_v56, 0.0 }
 0x12c   :  { %460 = vmatmul.mubr.f32.vlgmr.msra.gmra.mrb[0].mxu1 %v166_v58 }
 0x1ff   :  { %v256_v63 = vpop.f32.mrb[0].mxu1 }
 0x200   :  { %v257_v1 = vadd.f32 %v375_v62, %v256_v63  ;;  %v461_v0 = vpop.f32.mrb[1].mxu1 }
 0x202   :  { %v260_v2 = vmax.f32 %v257_v1, 0.0 }
 0x204   :  { %495 = vmatmul.mubr.f32.vlgmr.msra.gmra.mrb[2].mxu0 %v260_v2 }
 0x2d7   :  { %v350_v4 = vpop.f32.mrb[2].mxu0 }
 0x2d8   :  { %v351_v5 = vadd.f32 %v376_v3, %v350_v4  ;;  %v496_v6 = vpop.f32.mrb[3].mxu0 }
 0x2da   :  { %355 = vst.msk [vmem:[#allocation10] sm:$0xff] %vm354_vm2, %v351_v5 }
 0x2db   :  { %660 = shalt.err (!%p657_p8)
}
 0x2dc   :  { %s661_s9 = scalar_lea.hbm %s835_s7, 128 }
 0x2dd   :  { %p662_p9 = scmp.ne.s32.totalorder %s835_s7, %s661_s9  ;;  %p665_p10 = scmp.lt.u32.totalorder %s661_s9, %s835_s7 }
 0x2df   :  { %p667_p11 = pnand %p665_p10, %p662_p9 }
 0x2e1   :  { %670 = shalt.err (!%p667_p11)
}
 0x2e2   :  { %365 = dma.vmem_to_hbm [thread:$0]  %s363_s29, 128, %s835_s7, [#allocation4]  }
 0x2e3   :  { %677 = dma.done.wait [#allocation4], 128  }
 0x2e4   :  { %678 = vsyncadd [#allocation4], 4294967168 }
 0x2e5   :  { %369 = vsyncpa [#allocation3], 1 }
 0x2e6   :  { %370 = vsyncpa [#allocation6], 1 }
 0x2e7   :  { %371 = vsyncpa [#allocation9], 1 }
 0x2e8   :  { %372 = vsyncpa [#allocation4], 1 }

</bundles_post_ra>
